<compile_context>
chip_gen: v7x
topology: tpu7x:2x2x1
jax: 0.10.0
libtpu: 0.0.40
codegen_flags: <defaults>
</compile_context>

<pallas_src>
import math

import jax
import jax.numpy as jnp
from jax.experimental import pallas as pl
from jax.experimental.pallas import tpu as pltpu


_MAX_LANE_WIDTH = 32768  # lane-dense last dim: large multiple of 128 -> unmasked vst


def _copy_kernel(x_ref, o_ref):
    # Pure pass-through; TransformerBlock.forward(x) == x.
    o_ref[...] = x_ref[...]


def _tpu_generation_params():
    """Returns (target copy-block bytes, split rows across 2 TensorCores?, vmem_limit_bytes)."""
    kind = ""
    try:
        kind = jax.devices()[0].device_kind.lower()
    except Exception:  # pragma: no cover - interpret/CPU fallback
        pass
    if "v5" in kind:
        # v5e scoped-VMEM default is 16 MiB: 2 MiB blocks -> ~8 MiB double-buffered pipeline.
        return 2 * 1024 * 1024, False, None
    if "v6" in kind:
        # v6e scoped-VMEM default is 32 MiB: 4 MiB blocks -> ~16 MiB pipeline.
        return 4 * 1024 * 1024, False, None
    if "7" in kind:
        # v7x: 2 TCs and ~3.2 TB/s HBM -> bigger blocks amortize the ~0.35 us per-step
        # overhead; raise scoped VMEM to 40 MiB (still well under 64 MiB physical).
        return 8 * 1024 * 1024, True, 40 * 1024 * 1024
    # Unknown / older generation: conservative default.
    return 4 * 1024 * 1024, False, None


def _lane_dense_width(total: int):
    """Largest multiple of 128 (<= _MAX_LANE_WIDTH) that divides `total`, or None."""
    hi = min(total, _MAX_LANE_WIDTH)
    for cand in range(hi - hi % 128, 0, -128):
        if total % cand == 0:
            return cand
    return None


def _pick_tile_rows(rows: int, rows_per_block: int) -> int:
    """Block row count: prefer an 8-aligned divisor of `rows` (no masked ragged tail),
    else an 8-aligned non-divisor (Pallas masks the final block), else full extent."""
    if rows_per_block >= rows:
        return rows
    cap = max(8, (min(rows, rows_per_block) // 8) * 8)
    for cand in range(cap, 0, -8):
        if rows % cand == 0:
            return cand
    return cap


def transformer_block_forward(x: jax.Array) -> jax.Array:
    """TransformerBlock.forward: exact identity — no kernel, zero HBM traffic."""
    return x


def transformer_block_forward_materialized(x: jax.Array) -> jax.Array:
    """Identity forward that materializes a fresh output via a Pallas copy kernel.

    Prefer `transformer_block_forward` (free).  This path exists only when a distinct
    output buffer is required; it streams the tensor through VMEM with generation-sized,
    lane-dense, double-buffered row tiles.
    """
    orig_shape = x.shape
    total = math.prod(orig_shape) if orig_shape else 1
    itemsize = jnp.dtype(x.dtype).itemsize
    block_bytes, two_tc, vmem_limit = _tpu_generation_params()

    compiler_params = pltpu.CompilerParams(
        dimension_semantics=("parallel",),
        vmem_limit_bytes=vmem_limit,
    )

    lane = _lane_dense_width(total)
    if lane is None:
        # Awkward totals with no 128-multiple divisor: keep the original last dim and
        # tile over the leading rows so a block never exceeds ~block_bytes of VMEM.
        # TODO(synk): a last dim < 128 on this path still means masked vst.msk partial
        # stores; acceptable for the rare odd-shaped activations this covers.
        last = orig_shape[-1] if x.ndim >= 2 else total
        rows = max(1, total // max(1, last))
        flat = x.reshape(rows, last)
        rows_per_block = max(1, block_bytes // max(1, last * itemsize))
        tile_rows = _pick_tile_rows(rows, rows_per_block)
        grid = (pl.cdiv(rows, tile_rows),)
        out = pl.pallas_call(
            _copy_kernel,
            out_shape=jax.ShapeDtypeStruct((rows, last), x.dtype),
            grid=grid,
            in_specs=[pl.BlockSpec((tile_rows, last), lambda r: (r, 0))],
            out_specs=pl.BlockSpec((tile_rows, last), lambda r: (r, 0)),
            compiler_params=compiler_params,
        )(flat)
        return out.reshape(orig_shape)

    rows = total // lane
    flat = x.reshape(rows, lane)
    rows_per_block = max(1, block_bytes // (lane * itemsize))

    if rows_per_block >= rows:
        if two_tc and rows % 16 == 0:
            # v7x only: everything fits one block, but split in two so both
            # TensorCores each stream half the array.
            tile_rows = rows // 2
        else:
            # Single full-extent block: always satisfies the (8, 128) rule, and on
            # 1-TC chips (v5e/v6e) avoids pure serial-loop overhead from splitting.
            tile_rows = rows
    else:
        tile_rows = _pick_tile_rows(rows, rows_per_block)

    grid = (pl.cdiv(rows, tile_rows),)

    # TODO(synk): on v7x, consider pltpu.CORE_PARALLEL on the row axis once core_map
    # plumbing is in place; plain "parallel" is kept here for portability across chips.
    out = pl.pallas_call(
        _copy_kernel,
        out_shape=jax.ShapeDtypeStruct((rows, lane), x.dtype),
        grid=grid,
        in_specs=[pl.BlockSpec((tile_rows, lane), lambda r: (r, 0))],
        out_specs=pl.BlockSpec((tile_rows, lane), lambda r: (r, 0)),
        compiler_params=compiler_params,
    )(flat)
    return out.reshape(orig_shape)


if __name__ == "__main__":
    # Shapes consistent with the module: batch=2, seq=8, embedding_dim=32
    # (num_heads=4 -> embedding_dim % num_heads == 0 as asserted upstream).
    B, T, C = 2, 8, 32
    key = jax.random.PRNGKey(0)
    x = jax.random.normal(key, (B, T, C), dtype=jnp.float32)

    # Primary (recommended) path: identity, zero cost.
    y = transformer_block_forward(x)

    # Materializing path: lane-dense Pallas copy kernel.
    out = jax.block_until_ready(transformer_block_forward_materialized(x))

    # Exercise the awkward-shape fallback (no 128-multiple divisor) at tiny size.
    x_odd = jax.random.normal(jax.random.PRNGKey(1), (2, 7, 9), dtype=jnp.float32)
    out_odd = jax.block_until_ready(transformer_block_forward_materialized(x_odd))

    assert y.shape == (B, T, C)
    assert out.shape == (B, T, C) and out.dtype == x.dtype
    assert bool(jnp.array_equal(out, x))
    assert out_odd.shape == x_odd.shape and bool(jnp.array_equal(out_odd, x_odd))
    print("KERNEL_OK")
</pallas_src>

<mosaic_0001>
module attributes {stable_mosaic.version = 11 : i64} {
  func.func @_copy_kernel(%arg0: i32, %arg1: memref<1x512xf32, #tpu.memory_space<vmem>>, %arg2: memref<1x512xf32, #tpu.memory_space<vmem>>) attributes {dimension_semantics = [#tpu.dimension_semantics<parallel>], iteration_bounds = array<i64: 1>, scalar_prefetch = 0 : i64, scratch_operands = 0 : i64, tpu.core_type = #tpu.core_type<tc>, window_params = [{transform_indices = @transform_0, window_bounds = array<i64: 1, 512>}, {transform_indices = @transform_1, window_bounds = array<i64: 1, 512>}]} {
    %c0 = arith.constant 0 : index
    %c0_0 = arith.constant 0 : index
    %0 = vector.load %arg1[%c0, %c0_0] : memref<1x512xf32, #tpu.memory_space<vmem>>, vector<1x512xf32>
    %c0_1 = arith.constant 0 : index
    %c0_2 = arith.constant 0 : index
    %1 = vector.load %arg2[%c0_1, %c0_2] : memref<1x512xf32, #tpu.memory_space<vmem>>, vector<1x512xf32>
    tpu.vector_store %arg2[%c0_1, %c0_2], %0 {strides = array<i32>} : memref<1x512xf32, #tpu.memory_space<vmem>>, vector<1x512xf32>,
    return
  }
  func.func @transform_0(%arg0: i32) -> (i32, i32) {
    %c0_i32 = arith.constant 0 : i32
    %c0_i32_0 = arith.constant 0 : i32
    return %arg0, %c0_i32 : i32, i32
  }
  func.func @transform_1(%arg0: i32) -> (i32, i32) {
    %c0_i32 = arith.constant 0 : i32
    %c0_i32_0 = arith.constant 0 : i32
    return %arg0, %c0_i32 : i32, i32
  }
}

</mosaic_0001>

<bundles_post_ra>
// kernel: tpu_custom_call.1
= control target key start
LH: loop header
LB: loop body
LE: loop exit
PB: predicated region body
PF: predicated region fallthrough
CT: control target
= control target key end

     0   :  { %6 = vsyncpa [#allocation3], 0  ;;  %s128_s0 = inlined_call_operand.hbm [shape: f32[1,512], index: 0, kind: input, shape index: {}]   ;;  %s129_s1 = inlined_call_operand.hbm [shape: f32[1,512], index: 1, kind: output, shape index: {}]  }
   0x1   :  { %7 = vsyncpa [#allocation4], 0  ;;  %s92_s6 = smov [#allocation2]   ;;  %s44_s10 = scalar_lea.hbm %s128_s0, 64 }
   0x2   :  { %s14_s7 = sshll.u32 %s92_s6, 4  ;;  %p45_p0 = scmp.ne.s32.totalorder %s128_s0, %s44_s10  ;;  %s15_s7 = int_to_ptr.vmem [resolvable:$true] %s14_s7 }
   0x3   :  { %p48_p1 = scmp.lt.u32.totalorder %s44_s10, %s128_s0 }
   0x5   :  { %p50_p2 = pnand %p48_p1, %p45_p0 }
   0x7   :  { %53 = shalt.err (!%p50_p2)
}
   0x8   :  { %s54_s15 = scalar_lea.vmem %s15_s7, 64  ;;  %p59_p4 = scmp.lt.s32.totalorder %s15_s7, %s15_s7 }
   0x9   :  { %p55_p3 = scmp.ne.s32.totalorder %s15_s7, %s54_s15  ;;  %p60_p5 = scmp.lt.s32.totalorder %s54_s15, %s54_s15 }
   0xb   :  { %p61_p6 = por %p60_p5, %p59_p4 }
   0xd   :  { %p62_p7 = pnand %p61_p6, %p55_p3 }
   0xf   :  { %65 = shalt.err (!%p62_p7)
}
  0x10   :  { %17 = dma.hbm_to_vmem [thread:$0]  %s128_s0, 64, %s15_s7, [#allocation3]  }
  0x11   :  { %88 = dma.done.wait [#allocation3], 64  }
  0x12   :  { %89 = vsyncadd [#allocation3], 4294967232  ;;  %v22_v0 = vlaneseq  ;;  %s93_s18 = smov [#allocation5]   ;;  %v21_v1 = vld [vmem:[#allocation2] sm:$0xf] }
  0x13   :  { %s33_s19 = sshll.u32 %s93_s18, 4  ;;  %s34_s19 = int_to_ptr.vmem [resolvable:$true] %s33_s19 }
  0x14   :  { %vm24_vm0 = vcmp.lt.s32.totalorder %v22_v0, 512  ;;  %s66_s20 = scalar_lea.vmem %s34_s19, 64  ;;  %p71_p9 = scmp.lt.s32.totalorder %s34_s19, %s34_s19 }
  0x15   :  { %26 = vst.msk [vmem:[#allocation5] sm:$0xf] %vm24_vm0, %v21_v1  ;;  %p67_p8 = scmp.ne.s32.totalorder %s34_s19, %s66_s20  ;;  %p72_p10 = scmp.lt.s32.totalorder %s66_s20, %s66_s20 }
  0x17   :  { %p73_p11 = por %p72_p10, %p71_p9 }
  0x19   :  { %p74_p12 = pnand %p73_p11, %p67_p8 }
  0x1b   :  { %77 = shalt.err (!%p74_p12)
}
  0x1c   :  { %s78_s0 = scalar_lea.hbm %s129_s1, 64 }
  0x1d   :  { %p79_p13 = scmp.ne.s32.totalorder %s129_s1, %s78_s0  ;;  %p82_p0 = scmp.lt.u32.totalorder %s78_s0, %s129_s1 }
  0x1f   :  { %p84_p1 = pnand %p82_p0, %p79_p13 }
  0x21   :  { %87 = shalt.err (!%p84_p1)
}
  0x22   :  { %36 = dma.vmem_to_hbm [thread:$0]  %s34_s19, 64, %s129_s1, [#allocation4]  }
  0x23   :  { %90 = dma.done.wait [#allocation4], 64  }
  0x24   :  { %91 = vsyncadd [#allocation4], 4294967232 }
  0x25   :  { %40 = vsyncpa [#allocation3], 1 }
  0x26   :  { %41 = vsyncpa [#allocation4], 1 }

</bundles_post_ra>
